<compile_context>
chip_gen: v6e
topology: v6e:2x2x1
jax: 0.10.0
libtpu: 0.0.40
codegen_flags: <defaults>
</compile_context>

<pallas_src>
import functools

import jax
import jax.numpy as jnp
from jax import lax
from jax.experimental import pallas as pl
from jax.experimental.pallas import tpu as pltpu


# ---------------------------------------------------------------------------
# Kernel body (d_ff chunked, f32 accumulator scratch)
# ---------------------------------------------------------------------------
def ffn_kernel(x_ref, w1_ref, b1_ref, w2_ref, b2_ref, out_ref, acc_ref,
               *, dff_chunk, n_chunks):
    cdt = w1_ref.dtype                       # MXU compute dtype (bf16 fast path)
    x = x_ref[...].astype(cdt)               # no-op when x is already bf16

    # Fold the second bias into the accumulator init (f32, cast hoisted to wrapper).
    acc_ref[...] = jnp.broadcast_to(b2_ref[...], acc_ref.shape)

    def body(c, carry):
        off = pl.multiple_of(c * dff_chunk, dff_chunk)
        # (tile_m, d_model) @ (d_model, chunk) -> f32 accumulate on the MXU.
        h = jnp.dot(x, w1_ref[:, pl.ds(off, dff_chunk)],
                    preferred_element_type=jnp.float32)
        h = jnp.maximum(h + b1_ref[:, pl.ds(off, dff_chunk)], 0.0)   # bias + ReLU (VPU)
        # (tile_m, chunk) @ (chunk, d_model) -> accumulate into f32 scratch.
        acc_ref[...] += jnp.dot(h.astype(cdt), w2_ref[pl.ds(off, dff_chunk), :],
                                preferred_element_type=jnp.float32)
        return carry

    lax.fori_loop(0, n_chunks, body, None, unroll=n_chunks <= 8)
    out_ref[...] = acc_ref[...].astype(out_ref.dtype)


# ---------------------------------------------------------------------------
# Tile / VMEM budgeting helpers
# ---------------------------------------------------------------------------
def _round_up(x, m):
    return ((x + m - 1) // m) * m


def _vmem_capacity_bytes():
    """Generation-aware VMEM capacity; conservative fallback if query fails."""
    try:
        cap = getattr(pltpu.get_tpu_info(), "vmem_capacity_bytes", None)
        if cap:
            return int(cap)
    except Exception:
        pass
    return 64 << 20   # v7x per-TensorCore VMEM (most restrictive generation)


def _weight_bytes(d_model, d_ff, w_itemsize):
    # W1t + W2t single-buffered (pl.Buffered(1)) + f32 biases.
    return 2 * d_model * d_ff * w_itemsize + (d_model + d_ff) * 4


def _row_bytes(tile_m, d_model, dff_chunk, in_itemsize):
    io = 2 * 2 * tile_m * d_model * in_itemsize     # double-buffered x + out tiles
    acc = tile_m * d_model * 4                      # f32 accumulator scratch
    hidden = 2 * tile_m * dff_chunk * 4             # transient h chunk (f32 + cast copy)
    return io + acc + hidden


_TILE_M_CANDIDATES = (2048, 1792, 1536, 1280, 1024, 768, 512, 384, 256,
                      128, 64, 32, 16, 8)


def _pick_tile_m(M, d_model, d_ff, dff_chunk, in_itemsize, w_itemsize, vmem_budget):
    """Largest MXU-friendly row tile that fits the VMEM budget."""
    align = 8 if in_itemsize >= 4 else 16            # bf16 sublane packing -> >=16
    row_budget = max(vmem_budget - _weight_bytes(d_model, d_ff, w_itemsize), 4 << 20)
    m_cap = _round_up(min(M, _TILE_M_CANDIDATES[0]), align)
    tile = align
    for cand in _TILE_M_CANDIDATES:
        cand = min(_round_up(cand, align), m_cap)
        if _row_bytes(cand, d_model, dff_chunk, in_itemsize) <= row_budget:
            tile = cand
            break
    # Prefer an even (exactly-2) grid when a single step would cover all rows,
    # so v7x megacore can shard the row axis across both TensorCores.
    if pl.cdiv(M, tile) < 2:
        half = _round_up(pl.cdiv(M, 2), align)
        if half < tile:
            tile = half
    return tile


def _pick_dff_chunk(d_ff):
    for c in (512, 384, 256, 128):
        if c <= d_ff and d_ff % c == 0:
            return c
    return d_ff


# ---------------------------------------------------------------------------
# Wrapper
# ---------------------------------------------------------------------------
@functools.partial(jax.jit, static_argnames=("tile_m",))
def positionwise_feed_forward(x, w1t, b1, w2t, b2, *, tile_m=None):
    """FFN forward.

    x   : [B, S, d_model]   (bf16 recommended to drive the MXU fast path)
    w1t : [d_model, d_ff]   (= nn.Linear(d_model, d_ff).weight.T, hoisted once)
    b1  : [d_ff]
    w2t : [d_ff, d_model]   (= nn.Linear(d_ff, d_model).weight.T, hoisted once)
    b2  : [d_model]
    """
    B, S, d_model = x.shape
    d_ff = w1t.shape[1]
    M = B * S

    in_size = jnp.dtype(x.dtype).itemsize
    w_size = jnp.dtype(w1t.dtype).itemsize

    dff_chunk = _pick_dff_chunk(d_ff)
    n_chunks = d_ff // dff_chunk

    # ~0.75x physical VMEM: ~48 MiB on v7x, ~96 MiB on v5e/v6e.
    vmem_budget = (_vmem_capacity_bytes() * 3) // 4

    if tile_m is None:
        tile_m = _pick_tile_m(M, d_model, d_ff, dff_chunk, in_size, w_size,
                              vmem_budget)

    x2d = x.reshape(M, d_model)
    # Hoist the bias f32 casts out of the per-step / per-chunk path.
    b1_2d = b1.reshape(1, d_ff).astype(jnp.float32)
    b2_2d = b2.reshape(1, d_model).astype(jnp.float32)

    # No pad / slice: ragged last block is masked on store by Pallas.
    grid = (pl.cdiv(M, tile_m),)

    cost = pl.CostEstimate(
        flops=4 * M * d_model * d_ff,                 # two matmuls
        transcendentals=0,                            # ReLU is not transcendental
        bytes_accessed=(2 * M * d_model * in_size     # x read + out write
                        + _weight_bytes(d_model, d_ff, w_size)),
    )

    kernel = functools.partial(ffn_kernel, dff_chunk=dff_chunk, n_chunks=n_chunks)

    def _const(shape):
        # Constant-index operand: single resident copy, no double buffering.
        idx = lambda i: (0,) * len(shape)
        try:
            return pl.BlockSpec(shape, idx, pipeline_mode=pl.Buffered(1))
        except TypeError:
            return pl.BlockSpec(shape, idx)

    out = pl.pallas_call(
        kernel,
        out_shape=jax.ShapeDtypeStruct((M, d_model), x.dtype),
        grid_spec=pltpu.PrefetchScalarGridSpec(
            num_scalar_prefetch=0,
            grid=grid,
            in_specs=[
                pl.BlockSpec((tile_m, d_model), lambda i: (i, 0)),   # x rows (pipelined)
                _const((d_model, d_ff)),                             # W1t (resident)
                _const((1, d_ff)),                                   # b1 (f32)
                _const((d_ff, d_model)),                             # W2t (resident)
                _const((1, d_model)),                                # b2 (f32)
            ],
            out_specs=pl.BlockSpec((tile_m, d_model), lambda i: (i, 0)),
            scratch_shapes=[pltpu.VMEM((tile_m, d_model), jnp.float32)],
        ),
        compiler_params=pltpu.CompilerParams(
            dimension_semantics=("parallel",),
            vmem_limit_bytes=int(vmem_budget),
        ),
        cost_estimate=cost,
    )(x2d, w1t, b1_2d, w2t, b2_2d)

    return out.reshape(B, S, d_model)


# ---------------------------------------------------------------------------
# Pure-JAX reference (PyTorch layout weights)
# ---------------------------------------------------------------------------
def ffn_ref(x, W1, b1, W2, b2):
    h = jax.nn.relu(x @ W1.T + b1)
    return h @ W2.T + b2          # dropout is identity in inference


if __name__ == "__main__":
    # Small shapes consistent with the module, lane-dense (multiples of 128).
    B, S, d_model, d_ff = 2, 8, 128, 256

    key = jax.random.PRNGKey(0)
    kx, kw1, kb1, kw2, kb2 = jax.random.split(key, 5)

    x = jax.random.normal(kx, (B, S, d_model), dtype=jnp.float32)

    # PyTorch nn.Linear init: uniform(-1/sqrt(fan_in), 1/sqrt(fan_in)).
    bnd1 = 1.0 / jnp.sqrt(jnp.float32(d_model))
    W1 = jax.random.uniform(kw1, (d_ff, d_model), minval=-bnd1, maxval=bnd1,
                            dtype=jnp.float32)
    b1 = jax.random.uniform(kb1, (d_ff,), minval=-bnd1, maxval=bnd1,
                            dtype=jnp.float32)
    bnd2 = 1.0 / jnp.sqrt(jnp.float32(d_ff))
    W2 = jax.random.uniform(kw2, (d_model, d_ff), minval=-bnd2, maxval=bnd2,
                            dtype=jnp.float32)
    b2 = jax.random.uniform(kb2, (d_model,), minval=-bnd2, maxval=bnd2,
                            dtype=jnp.float32)

    # Hoist the weight transposes AND bf16 casts out of the hot path (feed the
    # MXU bf16 operands); biases stay f32.
    x_bf = x.astype(jnp.bfloat16)
    w1t = jnp.asarray(W1.T).astype(jnp.bfloat16)   # (d_model, d_ff)
    w2t = jnp.asarray(W2.T).astype(jnp.bfloat16)   # (d_ff, d_model)

    out = positionwise_feed_forward(x_bf, w1t, b1, w2t, b2)
    out = jax.block_until_ready(out)

    # Reference uses the same bf16-quantized params (upcast to f32) so the
    # check measures kernel numerics rather than quantization error.
    ref = ffn_ref(x_bf.astype(jnp.float32),
                  w1t.astype(jnp.float32).T, b1,
                  w2t.astype(jnp.float32).T, b2)

    assert out.shape == (B, S, d_model)
    assert out.dtype == jnp.bfloat16
    assert jnp.allclose(out.astype(jnp.float32), ref, atol=3e-2, rtol=3e-2), \
        "mismatch vs reference"

    print("KERNEL_OK")
</pallas_src>

<mosaic_0001>
module attributes {stable_mosaic.version = 11 : i64} {
  func.func @ffn_kernel(%arg0: i32, %arg1: memref<16x128xbf16, #tpu.memory_space<vmem>>, %arg2: memref<128x256xbf16, #tpu.memory_space<vmem>>, %arg3: memref<1x256xf32, #tpu.memory_space<vmem>>, %arg4: memref<256x128xbf16, #tpu.memory_space<vmem>>, %arg5: memref<1x128xf32, #tpu.memory_space<vmem>>, %arg6: memref<16x128xbf16, #tpu.memory_space<vmem>>, %arg7: memref<16x128xf32, #tpu.memory_space<vmem>>) attributes {dimension_semantics = [#tpu.dimension_semantics<parallel>], iteration_bounds = array<i64: 1>, scalar_prefetch = 0 : i64, scratch_operands = 1 : i64, tpu.core_type = #tpu.core_type<tc>, window_params = [{transform_indices = @transform_0, window_bounds = array<i64: 16, 128>}, {pipeline_mode = #tpu.pipeline_mode<synchronous>, transform_indices = @transform_1, window_bounds = array<i64: 128, 256>}, {pipeline_mode = #tpu.pipeline_mode<synchronous>, transform_indices = @transform_2, window_bounds = array<i64: 1, 256>}, {pipeline_mode = #tpu.pipeline_mode<synchronous>, transform_indices = @transform_3, window_bounds = array<i64: 256, 128>}, {pipeline_mode = #tpu.pipeline_mode<synchronous>, transform_indices = @transform_4, window_bounds = array<i64: 1, 128>}, {transform_indices = @transform_5, window_bounds = array<i64: 16, 128>}]} {
    %c0 = arith.constant 0 : index
    %c0_0 = arith.constant 0 : index
    %0 = vector.load %arg1[%c0, %c0_0] : memref<16x128xbf16, #tpu.memory_space<vmem>>, vector<16x128xbf16>
    %c0_1 = arith.constant 0 : index
    %c0_2 = arith.constant 0 : index
    %1 = vector.load %arg5[%c0_1, %c0_2] : memref<1x128xf32, #tpu.memory_space<vmem>>, vector<1x128xf32>
    %2 = vector.shape_cast %1 : vector<1x128xf32> to vector<1x128xf32>
    %3 = vector.broadcast %2 : vector<1x128xf32> to vector<16x128xf32>
    %c0_3 = arith.constant 0 : index
    %c0_4 = arith.constant 0 : index
    %4 = vector.load %arg7[%c0_3, %c0_4] : memref<16x128xf32, #tpu.memory_space<vmem>>, vector<16x128xf32>
    tpu.vector_store %arg7[%c0_3, %c0_4], %3 {strides = array<i32>} : memref<16x128xf32, #tpu.memory_space<vmem>>, vector<16x128xf32>,
    %c0_i32 = arith.constant 0 : i32
    %c256_i32 = arith.constant 256 : i32
    %5 = arith.muli %c0_i32, %c256_i32 : i32
    %6 = tpu.assume_multiple %5, 256 : i32
    %c0_5 = arith.constant 0 : index
    %7 = arith.index_cast %6 : i32 to index
    %8 = vector.load %arg2[%c0_5, %7] : memref<128x256xbf16, #tpu.memory_space<vmem>>, vector<128x256xbf16>
    %cst = arith.constant dense<0.000000e+00> : vector<16x256xf32>
    %9 = tpu.matmul %0, %8, %cst {dimension_numbers = #tpu.dot_dimension_numbers<[1], [0], [0], [1], [0, 0, 1, 1], [], []>} : vector<16x128xbf16>, vector<128x256xbf16>, vector<16x256xf32> -> vector<16x256xf32>
    %c0_6 = arith.constant 0 : index
    %10 = arith.index_cast %6 : i32 to index
    %11 = vector.load %arg3[%c0_6, %10] : memref<1x256xf32, #tpu.memory_space<vmem>>, vector<1x256xf32>
    %12 = vector.broadcast %11 : vector<1x256xf32> to vector<16x256xf32>
    %13 = arith.addf %9, %12 : vector<16x256xf32>
    %cst_7 = arith.constant 0.000000e+00 : f32
    %14 = vector.broadcast %cst_7 : f32 to vector<16x256xf32>
    %15 = arith.maximumf %13, %14 : vector<16x256xf32>
    %c0_8 = arith.constant 0 : index
    %c0_9 = arith.constant 0 : index
    %16 = vector.load %arg7[%c0_8, %c0_9] : memref<16x128xf32, #tpu.memory_space<vmem>>, vector<16x128xf32>
    %17 = arith.truncf %15 : vector<16x256xf32> to vector<16x256xbf16>
    %18 = arith.index_cast %6 : i32 to index
    %c0_10 = arith.constant 0 : index
    %19 = vector.load %arg4[%18, %c0_10] : memref<256x128xbf16, #tpu.memory_space<vmem>>, vector<256x128xbf16>
    %cst_11 = arith.constant dense<0.000000e+00> : vector<16x128xf32>
    %20 = tpu.matmul %17, %19, %cst_11 {dimension_numbers = #tpu.dot_dimension_numbers<[1], [0], [0], [1], [0, 0, 1, 1], [], []>} : vector<16x256xbf16>, vector<256x128xbf16>, vector<16x128xf32> -> vector<16x128xf32>
    %21 = arith.addf %16, %20 : vector<16x128xf32>
    %c0_12 = arith.constant 0 : index
    %c0_13 = arith.constant 0 : index
    %22 = vector.load %arg7[%c0_12, %c0_13] : memref<16x128xf32, #tpu.memory_space<vmem>>, vector<16x128xf32>
    tpu.vector_store %arg7[%c0_12, %c0_13], %21 {strides = array<i32>} : memref<16x128xf32, #tpu.memory_space<vmem>>, vector<16x128xf32>,
    %c1_i32 = arith.constant 1 : i32
    %c0_14 = arith.constant 0 : index
    %c0_15 = arith.constant 0 : index
    %23 = vector.load %arg7[%c0_14, %c0_15] : memref<16x128xf32, #tpu.memory_space<vmem>>, vector<16x128xf32>
    %24 = arith.truncf %23 : vector<16x128xf32> to vector<16x128xbf16>
    %c0_16 = arith.constant 0 : index
    %c0_17 = arith.constant 0 : index
    %25 = vector.load %arg6[%c0_16, %c0_17] : memref<16x128xbf16, #tpu.memory_space<vmem>>, vector<16x128xbf16>
    tpu.vector_store %arg6[%c0_16, %c0_17], %24 {strides = array<i32>} : memref<16x128xbf16, #tpu.memory_space<vmem>>, vector<16x128xbf16>,
    return
  }
  func.func @transform_0(%arg0: i32) -> (i32, i32) {
    %c0_i32 = arith.constant 0 : i32
    %c0_i32_0 = arith.constant 0 : i32
    return %arg0, %c0_i32 : i32, i32
  }
  func.func @transform_1(%arg0: i32) -> (i32, i32) {
    %c0_i32 = arith.constant 0 : i32
    %c0_i32_0 = arith.constant 0 : i32
    %c0_i32_1 = arith.constant 0 : i32
    return %c0_i32, %c0_i32_0 : i32, i32
  }
  func.func @transform_2(%arg0: i32) -> (i32, i32) {
    %c0_i32 = arith.constant 0 : i32
    %c0_i32_0 = arith.constant 0 : i32
    %c0_i32_1 = arith.constant 0 : i32
    return %c0_i32, %c0_i32_0 : i32, i32
  }
  func.func @transform_3(%arg0: i32) -> (i32, i32) {
    %c0_i32 = arith.constant 0 : i32
    %c0_i32_0 = arith.constant 0 : i32
    %c0_i32_1 = arith.constant 0 : i32
    return %c0_i32, %c0_i32_0 : i32, i32
  }
  func.func @transform_4(%arg0: i32) -> (i32, i32) {
    %c0_i32 = arith.constant 0 : i32
    %c0_i32_0 = arith.constant 0 : i32
    %c0_i32_1 = arith.constant 0 : i32
    return %c0_i32, %c0_i32_0 : i32, i32
  }
  func.func @transform_5(%arg0: i32) -> (i32, i32) {
    %c0_i32 = arith.constant 0 : i32
    %c0_i32_0 = arith.constant 0 : i32
    return %arg0, %c0_i32 : i32, i32
  }
}

</mosaic_0001>

<bundles_post_ra>
// kernel: positionwise_feed_forward.1
= control target key start
LH: loop header
LB: loop body
LE: loop exit
PB: predicated region body
PF: predicated region fallthrough
CT: control target
= control target key end

     0   :  { %10 = vsyncpa [#allocation4], 0  ;;  %s709_s0 = inlined_call_operand.hbm [shape: bf16[16,128], index: 0, kind: input, shape index: {}]   ;;  %s710_s1 = inlined_call_operand.hbm [shape: bf16[128,256], index: 1, kind: input, shape index: {}]   ;;  %s711_s2 = inlined_call_operand.vmem [shape: f32[1,256], index: 2, kind: input, shape index: {}]   ;;  %s712_s3 = inlined_call_operand.hbm [shape: bf16[256,128], index: 3, kind: input, shape index: {}]   ;;  %s713_s4 = inlined_call_operand.vmem [shape: f32[1,128], index: 4, kind: input, shape index: {}]   ;;  %s714_s5 = inlined_call_operand.hbm [shape: bf16[16,128], index: 5, kind: output, shape index: {}]  }
   0x1   :  { %11 = vsyncpa [#allocation7], 0 }
   0x2   :  { %12 = vsyncpa [#allocation5], 0  ;;  %s643_s18 = smov [#allocation6]  }
   0x3   :  { %s30_s19 = sshll.u32 %s643_s18, 4  ;;  %s31_s19 = int_to_ptr.vmem [resolvable:$true] %s30_s19 }
   0x4   :  { %s565_s20 = scalar_lea.vmem %s31_s19, 2048  ;;  %p570_p1 = scmp.lt.s32.totalorder %s31_s19, %s31_s19 }
   0x5   :  { %p566_p0 = scmp.ne.s32.totalorder %s31_s19, %s565_s20  ;;  %p571_p2 = scmp.lt.s32.totalorder %s565_s20, %s565_s20 }
   0x7   :  { %p572_p3 = por %p571_p2, %p570_p1 }
   0x9   :  { %p573_p4 = pnand %p572_p3, %p566_p0 }
   0xb   :  { %576 = shalt.err (!%p573_p4)
}
   0xc   :  { %s644_s21 = smov 128   ;;  %s645_s22 = smov 8  }
   0xd   :  { %36 = dma.hbm_to_vmem [thread:$0]  %s710_s1, 2048, %s31_s19, [#allocation7], %s644_s21, %s644_s21, %s645_s22  }
   0xe   :  { %s646_s25 = smov [#allocation3]  }
   0xf   :  { %s18_s26 = sshll.u32 %s646_s25, 4  ;;  %s19_s26 = int_to_ptr.vmem [resolvable:$true] %s18_s26 }
  0x10   :  { %s585_s27 = scalar_lea.vmem %s19_s26, 128  ;;  %p590_p6 = scmp.lt.s32.totalorder %s19_s26, %s19_s26 }
  0x11   :  { %p586_p5 = scmp.ne.s32.totalorder %s19_s26, %s585_s27  ;;  %p591_p7 = scmp.lt.s32.totalorder %s585_s27, %s585_s27 }
  0x13   :  { %p592_p8 = por %p591_p7, %p590_p6 }
  0x15   :  { %p593_p9 = pnand %p592_p8, %p586_p5 }
  0x17   :  { %596 = shalt.err (!%p593_p9)
}
  0x18   :  { %s647_s28 = smov 64   ;;  %s648_s29 = smov 4  }
  0x19   :  { %24 = dma.hbm_to_vmem [thread:$0]  %s709_s0, 128, %s19_s26, [#allocation4], %s647_s28, %s647_s28, %s648_s29  }
  0x1a   :  { %s649_s1 = smov [#allocation8]  }
  0x1b   :  { %s44_s7 = sshll.u32 %s649_s1, 4  ;;  %s45_s7 = int_to_ptr.vmem [resolvable:$true] %s44_s7 }
  0x1c   :  { %s605_s8 = scalar_lea.vmem %s45_s7, 2048  ;;  %p610_p11 = scmp.lt.s32.totalorder %s45_s7, %s45_s7 }
  0x1d   :  { %p606_p10 = scmp.ne.s32.totalorder %s45_s7, %s605_s8  ;;  %p611_p12 = scmp.lt.s32.totalorder %s605_s8, %s605_s8 }
  0x1f   :  { %p612_p13 = por %p611_p12, %p610_p11 }
  0x21   :  { %p613_p0 = pnand %p612_p13, %p606_p10 }
  0x23   :  { %616 = shalt.err (!%p613_p0)
}
  0x24   :  { %50 = dma.hbm_to_vmem [thread:$0]  %s712_s3, 2048, %s45_s7, [#allocation7], %s647_s28, %s647_s28, %s648_s29  }
  0x25   :  { %637 = dma.done.wait [#allocation4], 128  }
  0x26   :  { %638 = vsyncadd [#allocation4], 4294967168 }
  0x27   :  { %639 = dma.done.wait [#allocation7], 4096  }
  0x28   :  { %640 = vsyncadd [#allocation7], 4294963200  ;;  %v650_v0 = vmov 0   ;;  %v516_v1 = vld [vmem:[#allocation6 + $0x74] ss:$8 sps:$4 sm:$0xff]   ;;  %v545_v16 = vld [vmem:[#allocation8 + $0x68] sm:$0xff]   ;;  %v92_v34 = vlaneseq }
  0x29   :  { %220 = vmatprep.mubr.bf16.mxu0 %v650_v0  ;;  %v518_v2 = vld [vmem:[#allocation6 + $0x70] ss:$8 sps:$4 sm:$0xff]   ;;  %188 = vmatprep.subr.bf16.mxu0 %v516_v1  ;;  %v519_v3 = vld [vmem:[#allocation6 + $0x64] ss:$8 sps:$4 sm:$0xff]   ;;  %v521_v4 = vld [vmem:[#allocation6 + $0x60] ss:$8 sps:$4 sm:$0xff]  }
  0x2a   :  { %189 = vmatpush1.bf16.msra.mxu0 %v518_v2  ;;  %v522_v5 = vld [vmem:[#allocation6 + $0x54] ss:$8 sps:$4 sm:$0xff]   ;;  %v524_v6 = vld [vmem:[#allocation6 + $0x50] ss:$8 sps:$4 sm:$0xff]   ;;  %v525_v7 = vld [vmem:[#allocation6 + $0x44] ss:$8 sps:$4 sm:$0xff]  }
  0x2b   :  { %190 = vmatprep.subr.bf16.mxu0 %v519_v3  ;;  %v527_v8 = vld [vmem:[#allocation6 + $0x40] ss:$8 sps:$4 sm:$0xff]   ;;  %v528_v9 = vld [vmem:[#allocation6 + $0x34] ss:$8 sps:$4 sm:$0xff]   ;;  %v530_v11 = vld [vmem:[#allocation6 + $0x30] ss:$8 sps:$4 sm:$0xff]  }
  0x2c   :  { %v541_v10 = vld [vmem:[#allocation8 + $0x78] sm:$0xff]   ;;  %v531_v13 = vld [vmem:[#allocation6 + $0x24] ss:$8 sps:$4 sm:$0xff]   ;;  %v543_v14 = vld [vmem:[#allocation8 + $0x70] sm:$0xff]   ;;  %v93_v35 = vshrl.u32 %v92_v34, 7  ;;  %s651_s12 = smov [#allocation9]  }
  0x2d   :  { %v542_v12 = vld [vmem:[#allocation8 + $0x38] sm:$0xff]   ;;  %485 = vmatprep.subr.bf16.mxu1 %v541_v10  ;;  %v544_v15 = vld [vmem:[#allocation8 + $0x30] sm:$0xff]   ;;  %v533_v17 = vld [vmem:[#allocation6 + $0x20] ss:$8 sps:$4 sm:$0xff]   ;;  %s429_s13 = sshll.u32 %s651_s12, 4  ;;  %s430_s13 = int_to_ptr.vmem [resolvable:$true] %s429_s13 }
  0x2e   :  { %191 = vmatpush1.bf16.msra.mxu0 %v521_v4  ;;  %486 = vmatpush3.bf16.msra.mxu1 %v542_v12  ;;  %v534_v18 = vld [vmem:[#allocation6 + $0x14] ss:$8 sps:$4 sm:$0xff]   ;;  %v546_v19 = vld [vmem:[#allocation8 + $0x28] sm:$0xff]   ;;  %v547_v20 = vld [vmem:[#allocation8 + $0x60] sm:$0xff]   ;;  %v98_v36 = vsub.s32 1, %v93_v35  ;;  %v94_v37 = vsub.s32 0, %v93_v35  ;;  %p622_p2 = scmp.lt.s32.totalorder %s430_s13, %s430_s13 }
  0x2f   :  { %192 = vmatprep.subr.bf16.mxu0 %v522_v5  ;;  %487 = vmatprep.subr.bf16.mxu1 %v543_v14  ;;  %v536_v21 = vld [vmem:[#allocation6 + $0x10] ss:$8 sps:$4 sm:$0xff]   ;;  %v548_v22 = vld [vmem:[#allocation8 + $0x20] sm:$0xff]   ;;  %v553_v30 = vld [vmem:[#allocation8 + $0x48] sm:$0xff]   ;;  %s617_s14 = scalar_lea.vmem %s430_s13, 128 }
  0x30   :  { %v537_v23 = vld [vmem:[#allocation6 + $0x4] ss:$8 sps:$4 sm:$0xff]   ;;  %v549_v24 = vld [vmem:[#allocation8 + $0x58] sm:$0xff]   ;;  %v539_v25 = vld [vmem:[#allocation6] ss:$8 sps:$4 sm:$0xff]   ;;  %p618_p1 = scmp.ne.s32.totalorder %s430_s13, %s617_s14  ;;  %p623_p3 = scmp.lt.s32.totalorder %s617_s14, %s617_s14 }
  0x31   :  { %v550_v26 = vld [vmem:[#allocation8 + $0x18] sm:$0xff]   ;;  %v551_v28 = vld [vmem:[#allocation8 + $0x50] sm:$0xff]   ;;  %v554_v31 = vld [vmem:[#allocation8 + $0x8] sm:$0xff]  }
  0x32   :  { %193 = vmatpush1.bf16.msra.mxu0 %v524_v6  ;;  %488 = vmatpush3.bf16.msra.mxu1 %v544_v15  ;;  %v540_v27 = vld [vmem:[#allocation3] sm:$0xff]   ;;  %v552_v29 = vld [vmem:[#allocation8 + $0x10] sm:$0xff]   ;;  %v555_v32 = vld [vmem:[#allocation8 + $0x40] sm:$0xff]   ;;  %p624_p4 = por %p623_p3, %p622_p2 }
  0x33   :  { %194 = vmatprep.subr.bf16.mxu0 %v525_v7  ;;  %489 = vmatprep.subr.bf16.mxu1 %v545_v16  ;;  %v556_v33 = vld [vmem:[#allocation8] sm:$0xff]   ;;  %v90_v38 = vld [vmem:[%s711_s2] sm:$0x3] }
  0x34   :  { %v99_v40 = vrot.slane %v90_v38, %v98_v36  ;;  %v95_v41 = vrot.slane %v90_v38, %v94_v37  ;;  %v442_v59 = vld [vmem:[%s713_s4] ss:$0 sm:$0xff]  ;;  %p625_p5 = pnand %p624_p4, %p618_p1 }
  0x36   :  { %195 = vmatpush1.bf16.msra.mxu0 %v527_v8  ;;  %490 = vmatpush3.bf16.msra.mxu1 %v546_v19 }
  0x37   :  { %196 = vmatprep.subr.bf16.mxu0 %v528_v9  ;;  %491 = vmatprep.subr.bf16.mxu1 %v547_v20 }
  0x3a   :  { %197 = vmatpush1.bf16.msra.mxu0 %v530_v11  ;;  %492 = vmatpush3.bf16.msra.mxu1 %v548_v22 }
  0x3b   :  { %198 = vmatprep.subr.bf16.mxu0 %v531_v13  ;;  %493 = vmatprep.subr.bf16.mxu1 %v549_v24 }
  0x3e   :  { %199 = vmatpush1.bf16.msra.mxu0 %v533_v17  ;;  %494 = vmatpush3.bf16.msra.mxu1 %v550_v26 }
  0x3f   :  { %200 = vmatprep.subr.bf16.mxu0 %v534_v18  ;;  %495 = vmatprep.subr.bf16.mxu1 %v551_v28 }
  0x42   :  { %201 = vmatpush1.bf16.msra.mxu0 %v536_v21  ;;  %496 = vmatpush3.bf16.msra.mxu1 %v552_v29 }
  0x43   :  { %202 = vmatprep.subr.bf16.mxu0 %v537_v23  ;;  %497 = vmatprep.subr.bf16.mxu1 %v553_v30 }
  0x46   :  { %203 = vmatpush1.bf16.msra.mxu0 %v539_v25  ;;  %498 = vmatpush3.bf16.msra.mxu1 %v554_v31 }
  0x47   :  { %499 = vmatprep.subr.bf16.mxu1 %v555_v32 }
  0x49   :  { %221 = vmatmul.mubr.bf16.vlgmr.msra.gmra.mxu0 %v540_v27 }
  0x4a   :  { %500 = vmatpush3.bf16.msra.mxu1 %v556_v33 }
 0x109   :  { %v222_v39 = vpop.f32.mrf.mxu0 }
 0x10a   :  { %v223_v46 = vadd.f32 %v222_v39, %v95_v41 }
 0x10b   :  { %v224_v42 = vpop.f32.mrf.mxu0 }
 0x10c   :  { %v225_v44 = vadd.f32 %v224_v42, %v99_v40  ;;  %v231_v52 = vmax.f32 %v223_v46, 0.0 }
 0x10d   :  { %v226_v43 = vpop.f32.mrf.mxu0 }
 0x10e   :  { %v227_v45 = vadd.f32 %v226_v43, %v95_v41  ;;  %v232_v50 = vmax.f32 %v225_v44, 0.0 }
 0x10f   :  { %v228_v47 = vpop.f32.mrf.mxu0 }
 0x110   :  { %v229_v48 = vadd.f32 %v228_v47, %v99_v40  ;;  %v233_v49 = vmax.f32 %v227_v45, 0.0 }
 0x112   :  { %v234_v51 = vmax.f32 %v229_v48, 0.0  ;;  %v237_v54 = vpack.c.bf16 %v233_v49, %v231_v52 }
 0x114   :  { %v238_v53 = vpack.c.bf16 %v234_v51, %v232_v50 }
 0x116   :  { %399 = vmatprep.mubr.bf16.mxu1 %v238_v53 }
 0x117   :  { %400 = vmatmul.mubr.bf16.vlgmr.msra.gmra.mxu1 %v237_v54 }
 0x1d7   :  { %v501_v55 = vpop.f32.mrf.mxu1 }
 0x1d9   :  { %v502_v56 = vpop.f32.mrf.mxu1 }
 0x1da   :  { %v503_v58 = vadd.f32 %v502_v56, %v501_v55 }
 0x1db   :  { %v504_v57 = vpop.f32.mrf.mxu1 }
 0x1dc   :  { %v408_v62 = vadd.f32 %v503_v58, %v442_v59 }
 0x1dd   :  { %v505_v60 = vpop.f32.mrf.mxu1 }
 0x1de   :  { %v506_v61 = vadd.f32 %v505_v60, %v504_v57 }
 0x1e0   :  { %v409_v63 = vadd.f32 %v506_v61, %v442_v59 }
 0x1e2   :  { %v483_v0 = vpack.c.bf16 %v409_v63, %v408_v62 }
 0x1e4   :  { %484 = vst [vmem:[#allocation9] sm:$0xff] %v483_v0  }
 0x1e5   :  { %628 = shalt.err (!%p625_p5)
}
 0x1e6   :  { %435 = dma.vmem_to_hbm [thread:$0]  %s430_s13, 128, %s714_s5, [#allocation5], %s647_s28, %s647_s28, %s648_s29  }
 0x1e7   :  { %641 = dma.done.wait [#allocation5], 128  }
 0x1e8   :  { %642 = vsyncadd [#allocation5], 4294967168 }
 0x1e9   :  { %439 = vsyncpa [#allocation4], 1 }
 0x1ea   :  { %440 = vsyncpa [#allocation7], 1 }
 0x1eb   :  { %441 = vsyncpa [#allocation5], 1 }

</bundles_post_ra>
